<compile_context>
chip_gen: v7x
topology: tpu7x:2x2x1
jax: 0.10.0
libtpu: 0.0.40
codegen_flags: <defaults>
</compile_context>

<pallas_src>
import jax
import jax.numpy as jnp
from jax.experimental import pallas as pl
from jax.experimental.pallas import tpu as pltpu

LEAKY_SLOPE = 0.01  # nn.LeakyReLU default negative_slope
LANE = 128


def _round_up(x, m):
    return (x + m - 1) // m * m


# ----------------------------- fused math ----------------------------------
def _fused_math(a, w12, w3p):
    """Shared by the kernel and the matched reference.

    dot(a, W12) -> LeakyReLU (f32) -> dot(., W3_padded), f32 accumulation.
    """
    h = jnp.dot(a, w12, preferred_element_type=jnp.float32)
    h = jnp.where(h >= 0, h, LEAKY_SLOPE * h)
    return jnp.dot(h.astype(w3p.dtype), w3p, preferred_element_type=jnp.float32)


def _audio_nn_kernel(a_ref, w12_ref, w3_ref, o_ref):
    o_ref[...] = _fused_math(a_ref[...], w12_ref[...], w3_ref[...])


# --------------------------- offline weight prep ----------------------------
def pack_params(params, stream_dtype=jnp.bfloat16):
    """Fold W1@W2, zero-pad W3 to a lane-dense width, cast for HBM streaming."""
    w1, w2, w3 = params["w1"], params["w2"], params["w3"]
    out_dim = w3.shape[1]
    out_pad = _round_up(out_dim, LANE)
    w12 = (w1 @ w2).astype(stream_dtype)  # (D_audio, 32)
    w3p = jnp.zeros((w3.shape[0], out_pad), w3.dtype).at[:, :out_dim].set(w3)
    return {"w12": w12, "w3p": w3p.astype(stream_dtype), "out_dim": out_dim}


# ------------------------------ forward pass --------------------------------
def audio_nn_forward(a, c, packed, *, tile_b=512):
    """a: (B, D_audio), c: (B, D_clinical) [unused] -> (B, output_dim) f32."""
    del c  # AudioNN.forward ignores the clinical input.
    w12, w3p, out_dim = packed["w12"], packed["w3p"], packed["out_dim"]
    B, D = a.shape
    out_pad = w3p.shape[1]

    # Batch tile: multiple of 16 (bf16 sublane packing); pad B to whole tiles.
    tb = min(tile_b, _round_up(max(B, 1), 16))
    b_pad = _round_up(B, tb)

    a_s = a.astype(w12.dtype)
    if b_pad != B:
        a_s = jnp.pad(a_s, ((0, b_pad - B), (0, 0)))

    out = pl.pallas_call(
        _audio_nn_kernel,
        out_shape=jax.ShapeDtypeStruct((b_pad, out_pad), jnp.float32),
        grid_spec=pltpu.PrefetchScalarGridSpec(
            num_scalar_prefetch=0,
            grid=(b_pad // tb,),
            in_specs=[
                pl.BlockSpec((tb, D), lambda i: (i, 0)),       # streamed batch tile
                pl.BlockSpec(w12.shape, lambda i: (0, 0)),     # VMEM-resident weights
                pl.BlockSpec(w3p.shape, lambda i: (0, 0)),     # VMEM-resident weights
            ],
            out_specs=pl.BlockSpec((tb, out_pad), lambda i: (i, 0)),
        ),
        compiler_params=pltpu.CompilerParams(
            dimension_semantics=("parallel",),   # megacore split on v7x
            vmem_limit_bytes=32 * 1024 * 1024,
        ),
    )(a_s, w12, w3p)
    return out[:B, :out_dim]


# --------------------------- pure-JAX references -----------------------------
def ref_forward_f32(a, c, params):
    """Layer-by-layer f32 reference matching the PyTorch module exactly."""
    del c
    h = a @ params["w1"]
    h = h @ params["w2"]
    h = jnp.where(h >= 0, h, LEAKY_SLOPE * h)
    return h @ params["w3"]


# ------------------------- deterministic parameters -------------------------
def _uniform(key, shape, bound):
    return jax.random.uniform(key, shape, jnp.float32, -bound, bound)


def init_params(key, d_audio, output_dim):
    """PyTorch nn.Linear default init (uniform +-1/sqrt(fan_in)), no biases.

    Weights stored pre-transposed to (in_features, out_features).
    """
    k1, k2, k3 = jax.random.split(key, 3)
    return {
        "w1": _uniform(k1, (d_audio, 128), 1.0 / (d_audio ** 0.5)),
        "w2": _uniform(k2, (128, 32), 1.0 / (128.0 ** 0.5)),
        "w3": _uniform(k3, (32, output_dim), 1.0 / (32.0 ** 0.5)),
    }


if __name__ == "__main__":
    key = jax.random.PRNGKey(0)
    k_p, k_a, k_c = jax.random.split(key, 3)

    # Small shapes consistent with AudioNN.forward:
    #   audio_shape = (B, D_AUDIO) -> audio_shape[1] = D_AUDIO is the in-dim.
    B, D_AUDIO = 2, 16
    D_CLIN = 8            # clinical input exists but is unused by the module
    OUTPUT_DIM = 4

    params = init_params(k_p, D_AUDIO, OUTPUT_DIM)
    packed = pack_params(params)

    a = jax.random.normal(k_a, (B, D_AUDIO), jnp.float32)
    c = jax.random.normal(k_c, (B, D_CLIN), jnp.float32)

    out = jax.block_until_ready(audio_nn_forward(a, c, packed))
    assert out.shape == (B, OUTPUT_DIM), out.shape

    # Matched reference: same folding, bf16 streaming, f32 accumulation.
    ref_m = _fused_math(a.astype(packed["w12"].dtype),
                        packed["w12"], packed["w3p"])[:, :OUTPUT_DIM]
    assert jnp.allclose(out, ref_m, atol=1e-4, rtol=1e-4), (out, ref_m)

    # Full-f32 layer-by-layer reference (PyTorch semantics); only bf16
    # streaming rounding separates the two, so use a looser tolerance.
    ref_f = ref_forward_f32(a, c, params)
    assert jnp.allclose(out, ref_f, atol=2e-2, rtol=2e-2), (out, ref_f)

    print("KERNEL_OK")
</pallas_src>

<mosaic_0001>
module attributes {stable_mosaic.version = 11 : i64} {
  func.func @_audio_nn_kernel(%arg0: i32, %arg1: memref<16x16xbf16, #tpu.memory_space<vmem>>, %arg2: memref<16x32xbf16, #tpu.memory_space<vmem>>, %arg3: memref<32x128xbf16, #tpu.memory_space<vmem>>, %arg4: memref<16x128xf32, #tpu.memory_space<vmem>>) attributes {dimension_semantics = [#tpu.dimension_semantics<parallel>], iteration_bounds = array<i64: 1>, scalar_prefetch = 0 : i64, scratch_operands = 0 : i64, tpu.core_type = #tpu.core_type<tc>, window_params = [{transform_indices = @transform_0, window_bounds = array<i64: 16, 16>}, {pipeline_mode = #tpu.pipeline_mode<synchronous>, transform_indices = @transform_1, window_bounds = array<i64: 16, 32>}, {pipeline_mode = #tpu.pipeline_mode<synchronous>, transform_indices = @transform_2, window_bounds = array<i64: 32, 128>}, {transform_indices = @transform_3, window_bounds = array<i64: 16, 128>}]} {
    %c0 = arith.constant 0 : index
    %c0_0 = arith.constant 0 : index
    %0 = vector.load %arg1[%c0, %c0_0] : memref<16x16xbf16, #tpu.memory_space<vmem>>, vector<16x16xbf16>
    %c0_1 = arith.constant 0 : index
    %c0_2 = arith.constant 0 : index
    %1 = vector.load %arg2[%c0_1, %c0_2] : memref<16x32xbf16, #tpu.memory_space<vmem>>, vector<16x32xbf16>
    %c0_3 = arith.constant 0 : index
    %c0_4 = arith.constant 0 : index
    %2 = vector.load %arg3[%c0_3, %c0_4] : memref<32x128xbf16, #tpu.memory_space<vmem>>, vector<32x128xbf16>
    %cst = arith.constant dense<0.000000e+00> : vector<16x32xf32>
    %3 = tpu.matmul %0, %1, %cst {dimension_numbers = #tpu.dot_dimension_numbers<[1], [0], [0], [1], [0, 0, 1, 1], [], []>} : vector<16x16xbf16>, vector<16x32xbf16>, vector<16x32xf32> -> vector<16x32xf32>
    %cst_5 = arith.constant 0.000000e+00 : f32
    %4 = vector.broadcast %cst_5 : f32 to vector<16x32xf32>
    %5 = arith.cmpf oge, %3, %4 : vector<16x32xf32>
    %cst_6 = arith.constant 0.00999999977 : f32
    %6 = vector.broadcast %cst_6 : f32 to vector<16x32xf32>
    %7 = arith.mulf %6, %3 : vector<16x32xf32>
    %8 = arith.select %5, %3, %7 : vector<16x32xi1>, vector<16x32xf32>
    %9 = arith.truncf %8 : vector<16x32xf32> to vector<16x32xbf16>
    %cst_7 = arith.constant dense<0.000000e+00> : vector<16x128xf32>
    %10 = tpu.matmul %9, %2, %cst_7 {dimension_numbers = #tpu.dot_dimension_numbers<[1], [0], [0], [1], [0, 0, 1, 1], [], []>} : vector<16x32xbf16>, vector<32x128xbf16>, vector<16x128xf32> -> vector<16x128xf32>
    %c0_8 = arith.constant 0 : index
    %c0_9 = arith.constant 0 : index
    %11 = vector.load %arg4[%c0_8, %c0_9] : memref<16x128xf32, #tpu.memory_space<vmem>>, vector<16x128xf32>
    tpu.vector_store %arg4[%c0_8, %c0_9], %10 {strides = array<i32>} : memref<16x128xf32, #tpu.memory_space<vmem>>, vector<16x128xf32>,
    return
  }
  func.func @transform_0(%arg0: i32) -> (i32, i32) {
    %c0_i32 = arith.constant 0 : i32
    %c0_i32_0 = arith.constant 0 : i32
    return %arg0, %c0_i32 : i32, i32
  }
  func.func @transform_1(%arg0: i32) -> (i32, i32) {
    %c0_i32 = arith.constant 0 : i32
    %c0_i32_0 = arith.constant 0 : i32
    %c0_i32_1 = arith.constant 0 : i32
    return %c0_i32, %c0_i32_0 : i32, i32
  }
  func.func @transform_2(%arg0: i32) -> (i32, i32) {
    %c0_i32 = arith.constant 0 : i32
    %c0_i32_0 = arith.constant 0 : i32
    %c0_i32_1 = arith.constant 0 : i32
    return %c0_i32, %c0_i32_0 : i32, i32
  }
  func.func @transform_3(%arg0: i32) -> (i32, i32) {
    %c0_i32 = arith.constant 0 : i32
    %c0_i32_0 = arith.constant 0 : i32
    return %arg0, %c0_i32 : i32, i32
  }
}

</mosaic_0001>

<bundles_post_ra>
// kernel: tpu_custom_call.1
= control target key start
LH: loop header
LB: loop body
LE: loop exit
PB: predicated region body
PF: predicated region fallthrough
CT: control target
= control target key end

     0   :  { %8 = vsyncpa [#allocation3], 0  ;;  %s432_s0 = inlined_call_operand.hbm [shape: bf16[16,16], index: 0, kind: input, shape index: {}]   ;;  %s433_s1 = inlined_call_operand.hbm [shape: bf16[16,32], index: 1, kind: input, shape index: {}]   ;;  %s434_s2 = inlined_call_operand.hbm [shape: bf16[32,128], index: 2, kind: input, shape index: {}]   ;;  %s435_s3 = inlined_call_operand.hbm [shape: f32[16,128], index: 3, kind: output, shape index: {}]  }
   0x1   :  { %9 = vsyncpa [#allocation6], 0 }
   0x2   :  { %10 = vsyncpa [#allocation4], 0  ;;  %s338_s12 = smov [#allocation5]   ;;  %s339_s14 = smov [#allocation2]  }
   0x3   :  { %s28_s13 = sshll.u32 %s338_s12, 4  ;;  %s16_s15 = sshll.u32 %s339_s14, 4  ;;  %s29_s13 = int_to_ptr.vmem [resolvable:$true] %s28_s13  ;;  %s368_s15 = int_to_ptr.vmem [resolvable:$true] %s16_s15 }
   0x4   :  { %s244_s18 = scalar_lea.hbm %s433_s1, 128 }
   0x5   :  { %p245_p0 = scmp.ne.s32.totalorder %s433_s1, %s244_s18  ;;  %p248_p1 = scmp.lt.u32.totalorder %s244_s18, %s433_s1 }
   0x7   :  { %p250_p2 = pnand %p248_p1, %p245_p0 }
   0x9   :  { %253 = shalt.err (!%p250_p2)
}
   0xa   :  { %s254_s23 = scalar_lea.vmem %s29_s13, 128  ;;  %p259_p4 = scmp.lt.s32.totalorder %s29_s13, %s29_s13 }
   0xb   :  { %p255_p3 = scmp.ne.s32.totalorder %s29_s13, %s254_s23  ;;  %p260_p5 = scmp.lt.s32.totalorder %s254_s23, %s254_s23 }
   0xd   :  { %p261_p6 = por %p260_p5, %p259_p4 }
   0xf   :  { %p262_p7 = pnand %p261_p6, %p255_p3 }
  0x11   :  { %265 = shalt.err (!%p262_p7)
}
  0x12   :  { %s340_s24 = smov 64   ;;  %s341_s25 = smov 4  }
  0x13   :  { %34 = dma.hbm_to_vmem [thread:$0]  %s433_s1, 128, %s29_s13, [#allocation6], %s340_s24, %s340_s24, %s341_s25  }
  0x14   :  { %s266_s30 = scalar_lea.hbm %s432_s0, 128 }
  0x15   :  { %p267_p8 = scmp.ne.s32.totalorder %s432_s0, %s266_s30  ;;  %p270_p9 = scmp.lt.u32.totalorder %s266_s30, %s432_s0 }
  0x17   :  { %p272_p10 = pnand %p270_p9, %p267_p8 }
  0x19   :  { %275 = shalt.err (!%p272_p10)
}
  0x1a   :  { %s276_s8 = scalar_lea.vmem %s368_s15, 128  ;;  %p281_p12 = scmp.lt.s32.totalorder %s368_s15, %s368_s15 }
  0x1b   :  { %p277_p11 = scmp.ne.s32.totalorder %s368_s15, %s276_s8  ;;  %p282_p13 = scmp.lt.s32.totalorder %s276_s8, %s276_s8 }
  0x1d   :  { %p283_p0 = por %p282_p13, %p281_p12 }
  0x1f   :  { %p284_p1 = pnand %p283_p0, %p277_p11 }
  0x21   :  { %287 = shalt.err (!%p284_p1)
}
  0x22   :  { %22 = dma.hbm_to_vmem [thread:$0]  %s432_s0, 128, %s368_s15, [#allocation3], %s340_s24, %s340_s24, %s341_s25  }
  0x23   :  { %s342_s10 = smov [#allocation7]   ;;  %s288_s14 = scalar_lea.hbm %s434_s2, 256 }
  0x24   :  { %s40_s11 = sshll.u32 %s342_s10, 4  ;;  %p289_p2 = scmp.ne.s32.totalorder %s434_s2, %s288_s14  ;;  %s41_s11 = int_to_ptr.vmem [resolvable:$true] %s40_s11 }
  0x25   :  { %p292_p3 = scmp.lt.u32.totalorder %s288_s14, %s434_s2 }
  0x27   :  { %p294_p4 = pnand %p292_p3, %p289_p2 }
  0x29   :  { %297 = shalt.err (!%p294_p4)
}
  0x2a   :  { %s298_s20 = scalar_lea.vmem %s41_s11, 256  ;;  %p303_p6 = scmp.lt.s32.totalorder %s41_s11, %s41_s11 }
  0x2b   :  { %p299_p5 = scmp.ne.s32.totalorder %s41_s11, %s298_s20  ;;  %p304_p7 = scmp.lt.s32.totalorder %s298_s20, %s298_s20 }
  0x2d   :  { %p305_p8 = por %p304_p7, %p303_p6 }
  0x2f   :  { %p306_p9 = pnand %p305_p8, %p299_p5 }
  0x31   :  { %309 = shalt.err (!%p306_p9)
}
  0x32   :  { %46 = dma.hbm_to_vmem [thread:$0]  %s434_s2, 256, %s41_s11, [#allocation6], %s340_s24, %s340_s24, %s341_s25  }
  0x33   :  { %332 = dma.done.wait [#allocation3], 128  }
  0x34   :  { %333 = vsyncadd [#allocation3], 4294967168 }
  0x35   :  { %334 = dma.done.wait [#allocation6], 384  }
  0x36   :  { %335 = vsyncadd [#allocation6], 4294966912  ;;  %v343_v0 = vmov 0.0   ;;  %vm344_vm0 = vmmov 0   ;;  %v240_v1 = vld [vmem:[#allocation5] sm:$0xff]   ;;  %v241_v2 = vld [vmem:[#allocation2] sm:$0xff]  }
  0x37   :  { %216 = vmatprep.subr.bf16.mxu0 %v343_v0  ;;  %218 = vmatprep.mubr.msk.bf16.mxu0 %vm344_vm0, %v343_v0  ;;  %vm76_vm1 = vcmask 130048   ;;  %v242_v3 = vld [vmem:[#allocation7] sm:$0xff]   ;;  %v243_v4 = vld [vmem:[#allocation7 + $0x8] sm:$0xff]   ;;  %vm140_vm4 = vcmask 261120   ;;  %s345_s2 = smov [#allocation8]  }
  0x38   :  { %222 = vmatprep.subr.bf16.mxu1 %v343_v0  ;;  %226 = vmatprep.mubr.msk.bf16.mxu1 %vm344_vm0, %v343_v0  ;;  %s192_s21 = sshll.u32 %s345_s2, 4  ;;  %s193_s21 = int_to_ptr.vmem [resolvable:$true] %s192_s21 }
  0x39   :  { %217 = vmatpush3.bf16.msra.mxu0 %v240_v1  ;;  %223 = vmatpush3.bf16.msra.mxu1 %v242_v3  ;;  %s310_s22 = scalar_lea.vmem %s193_s21, 256  ;;  %p315_p11 = scmp.lt.s32.totalorder %s193_s21, %s193_s21 }
  0x3a   :  { %224 = vmatprep.subr.bf16.mxu1 %v343_v0  ;;  %p311_p10 = scmp.ne.s32.totalorder %s193_s21, %s310_s22  ;;  %p316_p12 = scmp.lt.s32.totalorder %s310_s22, %s310_s22 }
  0x3c   :  { %219 = vmatmul.mubr.msk.bf16.vlgmr.msra.gmra.mrb[0].mxu0 %vm76_vm1, %v241_v2  ;;  %p317_p13 = por %p316_p12, %p315_p11 }
  0x3d   :  { %225 = vmatpush3.bf16.msra.mxu1 %v243_v4 }
  0x3e   :  { %p318_p0 = pnand %p317_p13, %p311_p10 }
 0x10f   :  { %v114_v5 = vpop.f32.mrb[0].mxu0 }
 0x110   :  { %v123_v6 = vmul.f32 0.01, %v114_v5  ;;  %v220_v7 = vpop.f32.mrb[1].mxu0  ;;  %vm121_vm2 = vcmp.ge.f32.partialorder %v114_v5, 0.0 }
 0x111   :  { %v117_v8 = vpop.f32.mrb[2].mxu0 }
 0x112   :  { %vm122_vm3 = vcmp.ge.f32.partialorder %v117_v8, 0.0  ;;  %v124_v9 = vmul.f32 0.01, %v117_v8  ;;  %v221_v10 = vpop.f32.mrb[3].mxu0  ;;  %v125_v11 = vsel %vm121_vm2, %v114_v5, %v123_v6 }
 0x114   :  { %v126_v12 = vsel %vm122_vm3, %v117_v8, %v124_v9 }
 0x115   :  { %v127_v13 = vpack.c.bf16 %v126_v12, %v125_v11 }
 0x117   :  { %227 = vmatmul.mubr.msk.bf16.vlgmr.msra.gmra.mrb[0].mxu1 %vm140_vm4, %v127_v13 }
 0x1ea   :  { %v178_v14 = vpop.f32.mrb[0].mxu1 }
 0x1eb   :  { %185 = vst [vmem:[#allocation8] sm:$0xff] %v178_v14  ;;  %v228_v15 = vpop.f32.mrb[1].mxu1 }
 0x1ec   :  { %v181_v16 = vpop.f32.mrb[2].mxu1 }
 0x1ed   :  { %186 = vst [vmem:[#allocation8 + $0x8] sm:$0xff] %v181_v16  ;;  %v229_v17 = vpop.f32.mrb[3].mxu1 }
 0x1ee   :  { %321 = shalt.err (!%p318_p0)
}
 0x1ef   :  { %s322_s25 = scalar_lea.hbm %s435_s3, 256 }
 0x1f0   :  { %p323_p1 = scmp.ne.s32.totalorder %s435_s3, %s322_s25  ;;  %p326_p2 = scmp.lt.u32.totalorder %s322_s25, %s435_s3 }
 0x1f2   :  { %p328_p3 = pnand %p326_p2, %p323_p1 }
 0x1f4   :  { %331 = shalt.err (!%p328_p3)
}
 0x1f5   :  { %s346_s30 = smov 128   ;;  %s347_s4 = smov 8  }
 0x1f6   :  { %198 = dma.vmem_to_hbm [thread:$0]  %s193_s21, 256, %s435_s3, [#allocation4], %s346_s30, %s346_s30, %s347_s4  }
 0x1f7   :  { %336 = dma.done.wait [#allocation4], 256  }
 0x1f8   :  { %337 = vsyncadd [#allocation4], 4294967040 }
 0x1f9   :  { %202 = vsyncpa [#allocation3], 1 }
 0x1fa   :  { %203 = vsyncpa [#allocation6], 1 }
 0x1fb   :  { %204 = vsyncpa [#allocation4], 1 }

</bundles_post_ra>
